<compile_context>
chip_gen: v7x
topology: tpu7x:2x2x1
jax: 0.10.0
libtpu: 0.0.40
codegen_flags: <defaults>
</compile_context>

<pallas_src>
import functools
import math

import jax
import jax.numpy as jnp
from jax.experimental import pallas as pl
from jax.experimental.pallas import tpu as pltpu

_INV_SQRT2 = 0.7071067811865476  # 1/sqrt(2), hoisted python literal


def _ffn_kernel(x_ref, w1_ref, b1_ref, w2_ref, b2_ref, o_ref, acc_ref):
    # x_ref:  (tile_n, dim)      bf16
    # w1_ref: (dim, tile_h)      bf16,  b1_ref: (1, tile_h) f32
    # w2_ref: (tile_h, dim)      bf16,  b2_ref: (1, dim)    f32
    # o_ref:  (tile_n, dim)      f32
    # acc_ref:(tile_n, dim)      f32 scratch, resident across the hidden (j) axis
    j = pl.program_id(1)

    @pl.when(j == 0)
    def _():
        acc_ref[...] = jnp.zeros_like(acc_ref)

    # First matmul (MXU, bf16 in / f32 accumulate) + per-tile slice of b1.
    h = jnp.dot(x_ref[...], w1_ref[...], preferred_element_type=jnp.float32)
    h = h + b1_ref[...]
    # Exact (erf-based) GELU, matching torch.nn.GELU() default (approximate='none').
    h = 0.5 * h * (1.0 + jax.lax.erf(h * _INV_SQRT2))
    # Dropout(p=0.0) is a no-op in forward/eval semantics.
    # Partial contribution of this hidden tile to the output.
    acc_ref[...] += jnp.dot(h.astype(w2_ref.dtype), w2_ref[...],
                            preferred_element_type=jnp.float32)

    @pl.when(j == pl.num_programs(1) - 1)
    def _():
        o_ref[...] = (acc_ref[...] + b2_ref[...]).astype(o_ref.dtype)


def _round_up(x, m):
    return (x + m - 1) // m * m


@functools.partial(jax.jit, static_argnames=("tile_n", "tile_h"))
def feed_forward(x, w1, b1, w2, b2, *, tile_n=256, tile_h=512):
    # x: [N, dim]; w1: [dim, hidden] bf16; b1: [1, hidden] f32;
    # w2: [hidden, dim] bf16; b2: [1, dim] f32. Returns f32 [N, dim].
    n, dim = x.shape
    hidden = w1.shape[1]

    tile_h = min(tile_h, hidden)
    assert hidden % tile_h == 0, "hidden must be a multiple of tile_h"

    # Pad rows so the N tile is usable; clip the tile for tiny N so we don't inflate work.
    n_pad = _round_up(n, 8)
    tile_n = min(tile_n, n_pad)
    n_pad = _round_up(n, tile_n)

    x_c = x.astype(jnp.bfloat16)
    if n_pad != n:
        x_c = jnp.pad(x_c, ((0, n_pad - n), (0, 0)))

    grid = (n_pad // tile_n, hidden // tile_h)

    cost = pl.CostEstimate(
        flops=4 * n_pad * dim * hidden,            # two matmuls, 2*N*dim*hidden each
        transcendentals=n_pad * hidden,            # erf
        bytes_accessed=(x_c.size * 2 + w1.size * 2 + w2.size * 2
                        + b1.size * 4 + b2.size * 4 + n_pad * dim * 4),
    )

    out = pl.pallas_call(
        _ffn_kernel,
        out_shape=jax.ShapeDtypeStruct((n_pad, dim), jnp.float32),
        grid_spec=pltpu.PrefetchScalarGridSpec(
            num_scalar_prefetch=0,
            grid=grid,
            in_specs=[
                pl.BlockSpec((tile_n, dim), lambda i, j: (i, 0)),   # x row tile
                pl.BlockSpec((dim, tile_h), lambda i, j: (0, j)),   # W1 hidden tile
                pl.BlockSpec((1, tile_h), lambda i, j: (0, j)),     # b1 hidden tile
                pl.BlockSpec((tile_h, dim), lambda i, j: (j, 0)),   # W2 hidden tile
                pl.BlockSpec((1, dim), lambda i, j: (0, 0)),        # b2 (whole)
            ],
            out_specs=pl.BlockSpec((tile_n, dim), lambda i, j: (i, 0)),
            scratch_shapes=[pltpu.VMEM((tile_n, dim), jnp.float32)],
        ),
        compiler_params=pltpu.CompilerParams(
            dimension_semantics=("parallel", "arbitrary"),  # reduction axis last
            vmem_limit_bytes=48 * 1024 * 1024,              # fits v7x's 64 MiB VMEM budget
        ),
        cost_estimate=cost,
    )(x_c, w1, b1, w2, b2)

    if n_pad != n:
        out = out[:n]
    return out


def init_params(key, dim, mult=4):
    hidden = dim * mult
    k1, k2, k3, k4 = jax.random.split(key, 4)
    # Deterministic init mimicking nn.Linear's uniform(-1/sqrt(fan_in), 1/sqrt(fan_in)).
    lim1 = 1.0 / math.sqrt(dim)
    lim2 = 1.0 / math.sqrt(hidden)
    w1 = jax.random.uniform(k1, (dim, hidden), jnp.float32, -lim1, lim1)
    b1 = jax.random.uniform(k2, (1, hidden), jnp.float32, -lim1, lim1)
    w2 = jax.random.uniform(k3, (hidden, dim), jnp.float32, -lim2, lim2)
    b2 = jax.random.uniform(k4, (1, dim), jnp.float32, -lim2, lim2)
    # Weights in bf16 for the MXU; biases stay f32 (added after f32 accumulation).
    return w1.astype(jnp.bfloat16), b1, w2.astype(jnp.bfloat16), b2


if __name__ == "__main__":
    key = jax.random.PRNGKey(0)
    batch, seq, dim, mult = 2, 8, 128, 4   # dim multiple of 128 -> lane-dense output

    kx, kp = jax.random.split(key)
    x = jax.random.normal(kx, (batch, seq, dim), dtype=jnp.float32)
    w1, b1, w2, b2 = init_params(kp, dim, mult)

    x2d = x.reshape(batch * seq, dim)
    # tile_h=256 so the hidden-reduction grid axis has >1 step (exercises the accumulator).
    out2d = feed_forward(x2d, w1, b1, w2, b2, tile_n=256, tile_h=256)
    out = out2d.reshape(batch, seq, dim)
    jax.block_until_ready(out)

    # Pure-JAX f32 reference (exact GELU); kernel uses bf16 matmul inputs with f32
    # accumulation, so compare with bf16-level tolerance.
    w1f, w2f = w1.astype(jnp.float32), w2.astype(jnp.float32)
    h_ref = x2d @ w1f + b1
    h_ref = 0.5 * h_ref * (1.0 + jax.lax.erf(h_ref * _INV_SQRT2))
    ref = (h_ref @ w2f + b2).reshape(batch, seq, dim)
    assert jnp.allclose(out, ref, atol=3e-2, rtol=3e-2), "mismatch vs reference"

    print("KERNEL_OK")
</pallas_src>

<mosaic_0001>
module attributes {stable_mosaic.version = 11 : i64} {
  func.func @_ffn_kernel(%arg0: i32, %arg1: i32, %arg2: memref<16x128xbf16, #tpu.memory_space<vmem>>, %arg3: memref<128x256xbf16, #tpu.memory_space<vmem>>, %arg4: memref<1x256xf32, #tpu.memory_space<vmem>>, %arg5: memref<256x128xbf16, #tpu.memory_space<vmem>>, %arg6: memref<1x128xf32, #tpu.memory_space<vmem>>, %arg7: memref<16x128xf32, #tpu.memory_space<vmem>>, %arg8: memref<16x128xf32, #tpu.memory_space<vmem>>) attributes {dimension_semantics = [#tpu.dimension_semantics<parallel>, #tpu.dimension_semantics<arbitrary>], iteration_bounds = array<i64: 1, 2>, scalar_prefetch = 0 : i64, scratch_operands = 1 : i64, tpu.core_type = #tpu.core_type<tc>, window_params = [{transform_indices = @transform_0, window_bounds = array<i64: 16, 128>}, {transform_indices = @transform_1, window_bounds = array<i64: 128, 256>}, {transform_indices = @transform_2, window_bounds = array<i64: 1, 256>}, {transform_indices = @transform_3, window_bounds = array<i64: 256, 128>}, {pipeline_mode = #tpu.pipeline_mode<synchronous>, transform_indices = @transform_4, window_bounds = array<i64: 1, 128>}, {transform_indices = @transform_5, window_bounds = array<i64: 16, 128>}]} {
    %c0_i32 = arith.constant 0 : i32
    %0 = arith.cmpi eq, %arg1, %c0_i32 : i32
    %1 = arith.extui %0 : i1 to i32
    %c0_i32_0 = arith.constant 0 : i32
    %2 = arith.cmpi ne, %1, %c0_i32_0 : i32
    scf.if %2 {
      %cst_17 = arith.constant 0.000000e+00 : f32
      %26 = vector.broadcast %cst_17 : f32 to vector<16x128xf32>
      %c0_18 = arith.constant 0 : index
      %c0_19 = arith.constant 0 : index
      %27 = vector.load %arg8[%c0_18, %c0_19] : memref<16x128xf32, #tpu.memory_space<vmem>>, vector<16x128xf32>
      tpu.vector_store %arg8[%c0_18, %c0_19], %26 {strides = array<i32>} : memref<16x128xf32, #tpu.memory_space<vmem>>, vector<16x128xf32>,
    } else {
    }
    %c0 = arith.constant 0 : index
    %c0_1 = arith.constant 0 : index
    %3 = vector.load %arg2[%c0, %c0_1] : memref<16x128xbf16, #tpu.memory_space<vmem>>, vector<16x128xbf16>
    %c0_2 = arith.constant 0 : index
    %c0_3 = arith.constant 0 : index
    %4 = vector.load %arg3[%c0_2, %c0_3] : memref<128x256xbf16, #tpu.memory_space<vmem>>, vector<128x256xbf16>
    %cst = arith.constant dense<0.000000e+00> : vector<16x256xf32>
    %5 = tpu.matmul %3, %4, %cst {dimension_numbers = #tpu.dot_dimension_numbers<[1], [0], [0], [1], [0, 0, 1, 1], [], []>} : vector<16x128xbf16>, vector<128x256xbf16>, vector<16x256xf32> -> vector<16x256xf32>
    %c0_4 = arith.constant 0 : index
    %c0_5 = arith.constant 0 : index
    %6 = vector.load %arg4[%c0_4, %c0_5] : memref<1x256xf32, #tpu.memory_space<vmem>>, vector<1x256xf32>
    %7 = vector.broadcast %6 : vector<1x256xf32> to vector<16x256xf32>
    %8 = arith.addf %5, %7 : vector<16x256xf32>
    %cst_6 = arith.constant 5.000000e-01 : f32
    %9 = vector.broadcast %cst_6 : f32 to vector<16x256xf32>
    %10 = arith.mulf %9, %8 : vector<16x256xf32>
    %cst_7 = arith.constant 0.707106769 : f32
    %11 = vector.broadcast %cst_7 : f32 to vector<16x256xf32>
    %12 = arith.mulf %8, %11 : vector<16x256xf32>
    %13 = math.erf %12 : vector<16x256xf32>
    %cst_8 = arith.constant 1.000000e+00 : f32
    %14 = vector.broadcast %cst_8 : f32 to vector<16x256xf32>
    %15 = arith.addf %14, %13 : vector<16x256xf32>
    %16 = arith.mulf %10, %15 : vector<16x256xf32>
    %c0_9 = arith.constant 0 : index
    %c0_10 = arith.constant 0 : index
    %17 = vector.load %arg8[%c0_9, %c0_10] : memref<16x128xf32, #tpu.memory_space<vmem>>, vector<16x128xf32>
    %18 = arith.truncf %16 : vector<16x256xf32> to vector<16x256xbf16>
    %c0_11 = arith.constant 0 : index
    %c0_12 = arith.constant 0 : index
    %19 = vector.load %arg5[%c0_11, %c0_12] : memref<256x128xbf16, #tpu.memory_space<vmem>>, vector<256x128xbf16>
    %cst_13 = arith.constant dense<0.000000e+00> : vector<16x128xf32>
    %20 = tpu.matmul %18, %19, %cst_13 {dimension_numbers = #tpu.dot_dimension_numbers<[1], [0], [0], [1], [0, 0, 1, 1], [], []>} : vector<16x256xbf16>, vector<256x128xbf16>, vector<16x128xf32> -> vector<16x128xf32>
    %21 = arith.addf %17, %20 : vector<16x128xf32>
    %c0_14 = arith.constant 0 : index
    %c0_15 = arith.constant 0 : index
    %22 = vector.load %arg8[%c0_14, %c0_15] : memref<16x128xf32, #tpu.memory_space<vmem>>, vector<16x128xf32>
    tpu.vector_store %arg8[%c0_14, %c0_15], %21 {strides = array<i32>} : memref<16x128xf32, #tpu.memory_space<vmem>>, vector<16x128xf32>,
    %c1_i32 = arith.constant 1 : i32
    %23 = arith.cmpi eq, %arg1, %c1_i32 : i32
    %24 = arith.extui %23 : i1 to i32
    %c0_i32_16 = arith.constant 0 : i32
    %25 = arith.cmpi ne, %24, %c0_i32_16 : i32
    scf.if %25 {
      %c0_17 = arith.constant 0 : index
      %c0_18 = arith.constant 0 : index
      %26 = vector.load %arg8[%c0_17, %c0_18] : memref<16x128xf32, #tpu.memory_space<vmem>>, vector<16x128xf32>
      %c0_19 = arith.constant 0 : index
      %c0_20 = arith.constant 0 : index
      %27 = vector.load %arg6[%c0_19, %c0_20] : memref<1x128xf32, #tpu.memory_space<vmem>>, vector<1x128xf32>
      %28 = vector.broadcast %27 : vector<1x128xf32> to vector<16x128xf32>
      %29 = arith.addf %26, %28 : vector<16x128xf32>
      %c0_21 = arith.constant 0 : index
      %c0_22 = arith.constant 0 : index
      %30 = vector.load %arg7[%c0_21, %c0_22] : memref<16x128xf32, #tpu.memory_space<vmem>>, vector<16x128xf32>
      tpu.vector_store %arg7[%c0_21, %c0_22], %29 {strides = array<i32>} : memref<16x128xf32, #tpu.memory_space<vmem>>, vector<16x128xf32>,
    } else {
    }
    return
  }
  func.func @transform_0(%arg0: i32, %arg1: i32) -> (i32, i32) {
    %c0_i32 = arith.constant 0 : i32
    %c0_i32_0 = arith.constant 0 : i32
    return %arg0, %c0_i32 : i32, i32
  }
  func.func @transform_1(%arg0: i32, %arg1: i32) -> (i32, i32) {
    %c0_i32 = arith.constant 0 : i32
    %c0_i32_0 = arith.constant 0 : i32
    return %c0_i32, %arg1 : i32, i32
  }
  func.func @transform_2(%arg0: i32, %arg1: i32) -> (i32, i32) {
    %c0_i32 = arith.constant 0 : i32
    %c0_i32_0 = arith.constant 0 : i32
    return %c0_i32, %arg1 : i32, i32
  }
  func.func @transform_3(%arg0: i32, %arg1: i32) -> (i32, i32) {
    %c0_i32 = arith.constant 0 : i32
    %c0_i32_0 = arith.constant 0 : i32
    return %arg1, %c0_i32 : i32, i32
  }
  func.func @transform_4(%arg0: i32, %arg1: i32) -> (i32, i32) {
    %c0_i32 = arith.constant 0 : i32
    %c0_i32_0 = arith.constant 0 : i32
    %c0_i32_1 = arith.constant 0 : i32
    return %c0_i32, %c0_i32_0 : i32, i32
  }
  func.func @transform_5(%arg0: i32, %arg1: i32) -> (i32, i32) {
    %c0_i32 = arith.constant 0 : i32
    %c0_i32_0 = arith.constant 0 : i32
    return %arg0, %c0_i32 : i32, i32
  }
}

</mosaic_0001>

<bundles_post_ra>
// kernel: feed_forward.1
= control target key start
LH: loop header
LB: loop body
LE: loop exit
PB: predicated region body
PF: predicated region fallthrough
CT: control target
= control target key end

     0   :  { %10 = vsyncpa [#allocation4], 0  ;;  %s1481_s0 = inlined_call_operand.vmem [shape: bf16[16,128], index: 0, kind: input, shape index: {}]   ;;  %s1482_s1 = inlined_call_operand.hbm [shape: bf16[128,512], index: 1, kind: input, shape index: {}]   ;;  %s1483_s2 = inlined_call_operand.vmem [shape: f32[1,512], index: 2, kind: input, shape index: {}]   ;;  %s1484_s3 = inlined_call_operand.hbm [shape: bf16[512,128], index: 3, kind: input, shape index: {}]   ;;  %s1485_s4 = inlined_call_operand.vmem [shape: f32[1,128], index: 4, kind: input, shape index: {}]   ;;  %s1486_s5 = inlined_call_operand.hbm [shape: f32[16,128], index: 5, kind: output, shape index: {}]  }
   0x1   :  { %12 = vsyncpa [#allocation4 + $0x1], 0 }
   0x2   :  { %13 = vsyncpa [#allocation7], 0 }
   0x3   :  { %15 = vsyncpa [#allocation7 + $0x1], 0 }
   0x4   :  { %16 = vsyncpa [#allocation5], 0  ;;  %s1223_s18 = smov 0   ;;  %s1225_s19 = smov 0  }
   0x5   :  { %s1227_s20 = smov 0   ;;  %s1229_s21 = smov 0  }
   0x6   :  { %s1231_s22 = smov 0   ;;  %s1233_s23 = smov 0  }
   0x7 LB: > { %s832_s24 = sadd.s32 4294967295, %s1179_s23   ;;  %s31_s25 = sadd.s32 1, %s1175_s22  ;;  %s1179_s23 = sphi %s1233_s23, %s22_s23   ;;  %s1175_s22 = sphi %s1231_s22, %s1499_s22   ;;  %s1171_s21 = sphi %s1229_s21, %s1498_s21   ;;  %s1167_s20 = sphi %s1227_s20, %s1497_s20   ;;  %s1163_s19 = sphi %s1225_s19, %s1496_s19   ;;  %s1159_s18 = sphi %s1223_s18, %s1495_s18  }
   0x8   : > { %p32_p0 = scmp.ge.s32.totalorder %s31_s25, 2  ;;  %s67_s26 = sadd.s32 1, %s1167_s20 }
   0x9   : > { %p74_p1 = scmp.ne.s32.totalorder %s1167_s20, %s1163_s19  ;;  %p75_p2 = scmp.eq.s32.totalorder %s1179_s23, 0 }
   0xa   : > { %s1501_s25 = smov (%p32_p0, %s31_s25), 0  ;;  %p80_p4 = scmp.ne.s32.totalorder %s1163_s19, %s1159_s18 }
   0xb   : > { %p1259_p3 = por %p75_p2, %p74_p1  ;;  %s64_s28 = ssub.s32 %s1175_s22, %s1501_s25 }
   0xc   : > { %p81_p5 = scmp.eq.s32.totalorder %s832_s24, 0  ;;  %p65_p6 = scmp.eq.s32.totalorder %s64_s28, 0 }
   0xd   : > { %p925_p8 = scmp.lt.s32.totalorder %s1179_s23, 2  ;;  %s1277_s6 = sand.u32 1, %s1167_s20  }
   0xe   : > { %p1268_p7 = por %p81_p5, %p80_p4  ;;  %s886_s7 = sshll.u32 %s1175_s22, 7 }
   0xf   : > { %s1274_s30 = scalar_select %p65_p6, %s1167_s20, %s67_s26  }
  0x10   : > { %s1489_s29 = scalar_select %p1268_p7, 1, 0 }
  0x11   : > { %s836_s8 = sshll.u32 %s1277_s6, 7  ;;  %s1284_s11 = scalar_lea.hbm %s1482_s1, %s886_s7 }
  0x12   : > { %s219_s12 = scalar_lea.vmem [#allocation3], %s836_s8  ;;  %p1290_p9 = pnand %p925_p8, %p1259_p3 }
  0x13   : > { %s226_s13 = sshll.u32 %s219_s12, 4  ;;  %s216_s15 = scalar_lea.sflag [#allocation4], %s1277_s6  ;;  %s1294_s13 = int_to_ptr.vmem [resolvable:$true] %s226_s13 }
  0x14   : > { %s1035_s16 = scalar_lea.hbm %s1284_s11, 2048  ;;  %p1037_p12 = pneg %p1290_p9 }
  0x15   : > { %p1036_p11 = scmp.ne.s32.totalorder %s1284_s11, %s1035_s16  ;;  %s1040_s26 = scalar_lea.hbm %s1482_s1, 4096 }
  0x16   : > { %p1041_p1 = scmp.lt.u32.totalorder %s1284_s11, %s1482_s1  ;;  %p1042_p2 = scmp.lt.u32.totalorder %s1040_s26, %s1035_s16 }
  0x17   : > { %p1038_p13 = pnand %p1037_p12, %p1036_p11  ;;  %p1044_p4 = scmp.lt.u32.totalorder %s1035_s16, %s1284_s11 }
  0x18   : > { %p1043_p3 = por %p1042_p2, %p1041_p1 }
  0x19   : > { %p1039_p0 = pneg %p1038_p13 }
  0x1a   : > { %p1045_p5 = por %p1044_p4, %p1043_p3 }
  0x1c   : > { %p1046_p6 = pnand %p1045_p5, %p1039_p0 }
  0x1e   : > { %1049 = shalt.err (!%p1046_p6)
}
  0x1f   : > { %s1050_s7 = scalar_lea.vmem %s1294_s13, 2048  ;;  %s1181_s9 = smov [#allocation3]  }
  0x20   : > { %p1051_p8 = scmp.ne.s32.totalorder %s1294_s13, %s1050_s7  ;;  %s1055_s10 = sshll.u32 %s1181_s9, 4  ;;  %s1056_s10 = int_to_ptr.vmem [resolvable:$false] %s1055_s10 }
  0x21   : > { %s1057_s12 = scalar_lea.vmem %s1056_s10, 4096  ;;  %p1058_p10 = scmp.lt.s32.totalorder %s1294_s13, %s1056_s10 }
  0x22   : > { %p1053_p11 = pnand %p1051_p8, %p1037_p12  ;;  %p1059_p1 = scmp.lt.s32.totalorder %s1057_s12, %s1050_s7 }
  0x24   : > { %p1054_p13 = pneg %p1053_p11  ;;  %p1060_p2 = por %p1059_p1, %p1058_p10 }
  0x26   : > { %p1061_p3 = pnand %p1060_p2, %p1054_p13 }
  0x28   : > { %1064 = shalt.err (!%p1061_p3)
}
  0x29   : > { %s1182_s16 = smov 256   ;;  %s1183_s17 = smov 128  }
  0x2a   : > { %s1184_s18 = smov 8   ;;  %p263_p0 = scmp.lt.s32.totalorder %s1179_s23, 3 }
  0x2b   : > { %921 = dma.hbm_to_vmem [thread:$0]  (!%p1290_p9), %s1284_s11, 2048, %s1294_s13, %s216_s15, %s1182_s16, %s1183_s17, %s1184_s18  }
  0x2c   : > { %s887_s26 = sshll.u32 %s1175_s22, 11  ;;  %p1491_p10 = scmp.ge.s32.totalorder %s1179_s23, 1 }
  0x2d   : > { %s1336_s9 = scalar_lea.hbm %s1484_s3, %s887_s26  ;;  %s248_s10 = scalar_lea.vmem [#allocation6], %s836_s8 }
  0x2e   : > { %p1329_p4 = pnand %p1491_p10, %p263_p0  ;;  %s255_s12 = sshll.u32 %s248_s10, 4  ;;  %s1340_s12 = int_to_ptr.vmem [resolvable:$true] %s255_s12 }
  0x2f   : > { %s245_s11 = scalar_lea.sflag [#allocation7], %s1277_s6  ;;  %s1065_s13 = scalar_lea.hbm %s1336_s9, 2048 }
  0x30   : > { %p1066_p5 = scmp.ne.s32.totalorder %s1336_s9, %s1065_s13  ;;  %s1070_s17 = scalar_lea.hbm %s1484_s3, 4096 }
  0x31   : > { %p1071_p11 = scmp.lt.u32.totalorder %s1336_s9, %s1484_s3  ;;  %p1072_p13 = scmp.lt.u32.totalorder %s1070_s17, %s1065_s13 }
  0x32   : > { %p1068_p6 = pnand %p1066_p5, %p1037_p12  ;;  %p1074_p2 = scmp.lt.u32.totalorder %s1065_s13, %s1336_s9 }
  0x33   : > { %p1073_p1 = por %p1072_p13, %p1071_p11 }
  0x34   : > { %p1069_p8 = pneg %p1068_p6 }
  0x35   : > { %p1075_p3 = por %p1074_p2, %p1073_p1 }
  0x37   : > { %p1076_p0 = pnand %p1075_p3, %p1069_p8 }
  0x39   : > { %1079 = shalt.err (!%p1076_p0)
}
  0x3a   : > { %s1080_s8 = scalar_lea.vmem %s1340_s12, 2048  ;;  %s1185_s28 = smov [#allocation6]  }
  0x3b   : > { %p1081_p10 = scmp.ne.s32.totalorder %s1340_s12, %s1080_s8  ;;  %s1085_s7 = sshll.u32 %s1185_s28, 4  ;;  %s1086_s7 = int_to_ptr.vmem [resolvable:$false] %s1085_s7 }
  0x3c   : > { %s1087_s10 = scalar_lea.vmem %s1086_s7, 4096  ;;  %p1088_p7 = scmp.lt.s32.totalorder %s1340_s12, %s1086_s7 }
  0x3d   : > { %p1083_p5 = pnand %p1081_p10, %p1037_p12  ;;  %p1089_p11 = scmp.lt.s32.totalorder %s1087_s10, %s1080_s8 }
  0x3f   : > { %p1084_p6 = pneg %p1083_p5  ;;  %p1090_p13 = por %p1089_p11, %p1088_p7 }
  0x41   : > { %p1091_p1 = pnand %p1090_p13, %p1084_p6 }
  0x43   : > { %1094 = shalt.err (!%p1091_p1)
}
  0x44   : > { %s1186_s13 = smov 64   ;;  %s1187_s15 = smov 4  }
  0x45   : > { %924 = dma.hbm_to_vmem [thread:$0]  (!%p1290_p9), %s1336_s9, 2048, %s1340_s12, %s245_s11, %s1186_s13, %s1186_s13, %s1187_s15  }
  0x46   : > { %267 = sbr.rel (%p1329_p4) target bundleno = 615 (0x267), region = 40  ;;  %s269_s16 = sand.u32 (!%p1329_p4), 1, %s1163_s19  }
  0x47   : > { %s843_s17 = sshll.u32 (!%p1329_p4), %s269_s16, 7  ;;  %s270_s18 = scalar_lea.sflag (!%p1329_p4), [#allocation4], %s269_s16 }
  0x48   : > { %s1371_s26 = scalar_lea.vmem (!%p1329_p4), [#allocation3], %s843_s17  ;;  %p1493_p7 = scmp.ne.s32.totalorder (!%p1329_p4), %s1489_s29, 0 }
  0x4d   : > { %1146 = dma.done.wait (%p1493_p7), %s270_s18, 2048  }
  0x4e   : > { %1148 = vsyncadd (%p1493_p7), %s270_s18, 4294965248  ;;  %s279_s8 = scalar_lea.sflag [#allocation7], %s269_s16  ;;  %s1377_s14 = scalar_lea.vmem [#allocation6], %s843_s17 }
  0x4f   : > { %1150 = dma.done.wait (%p1493_p7), %s279_s8, 2048  }
  0x50   : > { %1152 = vsyncadd (%p1493_p7), %s279_s8, 4294965248  ;;  %s845_s6 = sshll.u32 %s1171_s21, 1  ;;  %p846_p12 = scmp.ne.s32.totalorder %s1171_s21, 0 }
  0x51   : > { %p326_p9 = scmp.lt.s32.totalorder %s845_s6, 3  ;;  %v1188_v0 = vmov (!%p846_p12), 0.0  }
  0x52   : > { %336 = sbr.rel (%p846_p12) target bundleno = 89 (0x59), region = 52  ;;  %337 = vst [vmem:[#allocation2] sm:$0xff] (!%p846_p12), %v1188_v0  ;;  %338 = vst [vmem:[#allocation2 + $0x8] sm:$0xff] (!%p846_p12), %v1188_v0 }
  0x53   : > { %s1503_s6 = smov (!%p326_p9, %s845_s6), 3 }
  0x54   : > { %s328_s12 = scalar_lea.vmem %s1483_s2, %s1503_s6 }
  0x59 PF: > { %v986_v1 = vld [vmem:[%s1371_s26 + $0x4] ss:$8 sps:$4 sm:$0xff]   ;;  %v988_v2 = vld [vmem:[%s1371_s26] ss:$8 sps:$4 sm:$0xff]   ;;  %v1189_v3 = vmov 0   ;;  %v1010_v22 = vld [vmem:[%s1481_s0] sm:$0xff]   ;;  %v359_v35 = vlaneseq }
  0x5a   : > { %487 = vmatprep.mubr.bf16.mxu0 %v1189_v3  ;;  %455 = vmatprep.subr.bf16.mxu0 %v986_v1  ;;  %v989_v4 = vld [vmem:[%s1371_s26 + $0x14] ss:$8 sps:$4 sm:$0xff]   ;;  %v991_v5 = vld [vmem:[%s1371_s26 + $0x10] ss:$8 sps:$4 sm:$0xff]   ;;  %v992_v6 = vld [vmem:[%s1371_s26 + $0x24] ss:$8 sps:$4 sm:$0xff]  }
  0x5b   : > { %456 = vmatpush1.bf16.msra.mxu0 %v988_v2  ;;  %v994_v7 = vld [vmem:[%s1371_s26 + $0x20] ss:$8 sps:$4 sm:$0xff]   ;;  %v995_v8 = vld [vmem:[%s1371_s26 + $0x34] ss:$8 sps:$4 sm:$0xff]   ;;  %v997_v9 = vld [vmem:[%s1371_s26 + $0x30] ss:$8 sps:$4 sm:$0xff]  }
  0x5c   : > { %457 = vmatprep.subr.bf16.mxu0 %v989_v4  ;;  %v998_v10 = vld [vmem:[%s1371_s26 + $0x44] ss:$8 sps:$4 sm:$0xff]   ;;  %v1000_v12 = vld [vmem:[%s1371_s26 + $0x40] ss:$8 sps:$4 sm:$0xff]   ;;  %v1001_v15 = vld [vmem:[%s1371_s26 + $0x54] ss:$8 sps:$4 sm:$0xff]  }
  0x5d   : > { %v1011_v11 = vld [vmem:[%s1377_s14 + $0x40] sm:$0xff]   ;;  %v1013_v14 = vld [vmem:[%s1377_s14 + $0x48] sm:$0xff]   ;;  %v1003_v17 = vld [vmem:[%s1371_s26 + $0x50] ss:$8 sps:$4 sm:$0xff]   ;;  %v360_v36 = vshrl.u32 %v359_v35, 7  ;;  %p880_p4 = scmp.ne.s32.totalorder %s1171_s21, 1 }
  0x5e   : > { %v1012_v13 = vld [vmem:[%s1377_s14] sm:$0xff]   ;;  %888 = vmatprep.subr.bf16.mxu1 %v1011_v11  ;;  %v1014_v16 = vld [vmem:[%s1377_s14 + $0x8] sm:$0xff]   ;;  %v1007_v20 = vld [vmem:[%s1371_s26 + $0x74] ss:$8 sps:$4 sm:$0xff]  }
  0x5f   : > { %458 = vmatpush1.bf16.msra.mxu0 %v991_v5  ;;  %889 = vmatpush3.bf16.msra.mxu1 %v1012_v13  ;;  %v1004_v18 = vld [vmem:[%s1371_s26 + $0x64] ss:$8 sps:$4 sm:$0xff]   ;;  %v1006_v19 = vld [vmem:[%s1371_s26 + $0x60] ss:$8 sps:$4 sm:$0xff]   ;;  %v1009_v21 = vld [vmem:[%s1371_s26 + $0x70] ss:$8 sps:$4 sm:$0xff]  }
  0x60   : > { %459 = vmatprep.subr.bf16.mxu0 %v992_v6  ;;  %890 = vmatprep.subr.bf16.mxu1 %v1013_v14  ;;  %v1015_v23 = vld [vmem:[%s1377_s14 + $0x50] sm:$0xff]   ;;  %v1017_v25 = vld [vmem:[%s1377_s14 + $0x58] sm:$0xff]   ;;  %v1019_v27 = vld [vmem:[%s1377_s14 + $0x60] sm:$0xff]   ;;  %v361_v37 = vsub.s32 0, %v360_v36  ;;  %v365_v39 = vsub.s32 1, %v360_v36 }
  0x61   : > { %v1016_v24 = vld [vmem:[%s1377_s14 + $0x10] sm:$0xff]   ;;  %v1018_v26 = vld [vmem:[%s1377_s14 + $0x18] sm:$0xff]   ;;  %v1020_v28 = vld [vmem:[%s1377_s14 + $0x20] sm:$0xff]  }
  0x62   : > { %v1021_v29 = vld [vmem:[%s1377_s14 + $0x68] sm:$0xff]   ;;  %v1023_v31 = vld [vmem:[%s1377_s14 + $0x70] sm:$0xff]   ;;  %v1025_v33 = vld [vmem:[%s1377_s14 + $0x78] sm:$0xff]  }
  0x63   : > { %460 = vmatpush1.bf16.msra.mxu0 %v994_v7  ;;  %891 = vmatpush3.bf16.msra.mxu1 %v1014_v16  ;;  %v1022_v30 = vld [vmem:[%s1377_s14 + $0x28] sm:$0xff]   ;;  %v1024_v32 = vld [vmem:[%s1377_s14 + $0x30] sm:$0xff]   ;;  %v1026_v34 = vld [vmem:[%s1377_s14 + $0x38] sm:$0xff]  }
  0x64   : > { %461 = vmatprep.subr.bf16.mxu0 %v995_v8  ;;  %892 = vmatprep.subr.bf16.mxu1 %v1015_v23  ;;  %v357_v38 = vld [vmem:[%s328_s12] sm:$0x3]  ;;  %v519_v13 = vld [vmem:[#allocation2 + $0x8] sm:$0xff] }
  0x65   : > { %v362_v40 = vrot.slane %v357_v38, %v361_v37  ;;  %v366_v41 = vrot.slane %v357_v38, %v365_v39 }
  0x67   : > { %462 = vmatpush1.bf16.msra.mxu0 %v997_v9  ;;  %893 = vmatpush3.bf16.msra.mxu1 %v1016_v24  ;;  %v518_v9 = vld [vmem:[#allocation2] sm:$0xff] }
  0x68   : > { %463 = vmatprep.subr.bf16.mxu0 %v998_v10  ;;  %894 = vmatprep.subr.bf16.mxu1 %v1017_v25 }
  0x6b   : > { %464 = vmatpush1.bf16.msra.mxu0 %v1000_v12  ;;  %895 = vmatpush3.bf16.msra.mxu1 %v1018_v26 }
  0x6c   : > { %465 = vmatprep.subr.bf16.mxu0 %v1001_v15  ;;  %896 = vmatprep.subr.bf16.mxu1 %v1019_v27 }
  0x6f   : > { %466 = vmatpush1.bf16.msra.mxu0 %v1003_v17  ;;  %897 = vmatpush3.bf16.msra.mxu1 %v1020_v28 }
  0x70   : > { %467 = vmatprep.subr.bf16.mxu0 %v1004_v18  ;;  %898 = vmatprep.subr.bf16.mxu1 %v1021_v29 }
  0x73   : > { %468 = vmatpush1.bf16.msra.mxu0 %v1006_v19  ;;  %899 = vmatpush3.bf16.msra.mxu1 %v1022_v30  ;;  %v881_v19 = vld [vmem:[%s1485_s4] ss:$0 sm:$0xff] (!%p880_p4) }
  0x74   : > { %469 = vmatprep.subr.bf16.mxu0 %v1007_v20  ;;  %900 = vmatprep.subr.bf16.mxu1 %v1023_v31 }
  0x77   : > { %470 = vmatpush1.bf16.msra.mxu0 %v1009_v21  ;;  %901 = vmatpush3.bf16.msra.mxu1 %v1024_v32 }
  0x78   : > { %902 = vmatprep.subr.bf16.mxu1 %v1025_v33 }
  0x7a   : > { %488 = vmatmul.mubr.bf16.vlgmr.msra.gmra.mrb[0].mxu0 %v1010_v22 }
  0x7b   : > { %903 = vmatpush3.bf16.msra.mxu1 %v1026_v34 }
 0x14d   : > { %v489_v42 = vpop.f32.mrb[0].mxu0 }
 0x14e   : > { %v490_v43 = vadd.f32 %v489_v42, %v362_v40  ;;  %v491_v44 = vpop.f32.mrb[1].mxu0 }
 0x14f   : > { %v492_v45 = vadd.f32 %v491_v44, %v366_v41  ;;  %v493_v46 = vpop.f32.mrb[2].mxu0 }
 0x150   : > { %v502_v47 = vmul.f32 0.70710677, %v490_v43  ;;  %v494_v48 = vadd.f32 %v493_v46, %v362_v40  ;;  %v495_v49 = vpop.f32.mrb[3].mxu0  ;;  %v498_v60 = vmul.f32 0.5, %v490_v43 }
 0x151   : > { %v503_v50 = vmul.f32 0.70710677, %v492_v45  ;;  %v496_v51 = vadd.f32 %v495_v49, %v366_v41  ;;  %v499_v63 = vmul.f32 0.5, %v492_v45 }
 0x152   : > { %1027 = verf.f32 %v502_v47  ;;  %v504_v52 = vmul.f32 0.70710677, %v494_v48  ;;  %v500_v61 = vmul.f32 0.5, %v494_v48 }
 0x153   : > { %1029 = verf.f32 %v503_v50  ;;  %v505_v53 = vmul.f32 0.70710677, %v496_v51  ;;  %v501_v0 = vmul.f32 0.5, %v496_v51 }
 0x154   : > { %1031 = verf.f32 %v504_v52 }
 0x155   : > { %1033 = verf.f32 %v505_v53 }
 0x15c   : > { %v1028_v54 = vpop.eup %1027 }
 0x15d   : > { %v1030_v55 = vpop.eup %1029  ;;  %v510_v56 = vadd.f32 1.0, %v1028_v54 }
 0x15e   : > { %v1032_v57 = vpop.eup %1031  ;;  %v511_v58 = vadd.f32 1.0, %v1030_v55 }
 0x15f   : > { %v1034_v59 = vpop.eup %1033  ;;  %v512_v62 = vadd.f32 1.0, %v1032_v57  ;;  %v514_v2 = vmul.f32 %v510_v56, %v498_v60 }
 0x160   : > { %v513_v1 = vadd.f32 1.0, %v1034_v59  ;;  %v515_v4 = vmul.f32 %v511_v58, %v499_v63 }
 0x161   : > { %v516_v3 = vmul.f32 %v512_v62, %v500_v61 }
 0x162   : > { %v517_v5 = vmul.f32 %v513_v1, %v501_v0 }
 0x163   : > { %v520_v6 = vpack.c.bf16 %v516_v3, %v514_v2 }
 0x164   : > { %v521_v7 = vpack.c.bf16 %v517_v5, %v515_v4 }
 0x166   : > { %682 = vmatprep.mubr.bf16.mxu1 %v521_v7 }
 0x167   : > { %683 = vmatmul.mubr.bf16.vlgmr.msra.gmra.mrb[0].mxu1 %v520_v6 }
 0x23a   : > { %v904_v8 = vpop.f32.mrb[0].mxu1 }
 0x23b   : > { %v905_v10 = vpop.f32.mrb[1].mxu1 }
 0x23c   : > { %v906_v11 = vadd.f32 %v905_v10, %v904_v8  ;;  %v907_v12 = vpop.f32.mrb[2].mxu1  ;;  %698 = sbr.rel (%p880_p4) target bundleno = 589 (0x24d), region = 56 }
 0x23d   : > { %v908_v14 = vpop.f32.mrb[3].mxu1 }
 0x23e   : > { %v691_v15 = vadd.f32 %v906_v11, %v518_v9  ;;  %v909_v16 = vadd.f32 %v908_v14, %v907_v12 }
 0x240   : > { %693 = vst [vmem:[#allocation2] sm:$0xff] %v691_v15  ;;  %v692_v17 = vadd.f32 %v909_v16, %v519_v13 }
 0x242   : > { %694 = vst [vmem:[#allocation2 + $0x8] sm:$0xff] %v692_v17 }
 0x247   : > { %v699_v18 = vld [vmem:[#allocation2] sm:$0xff] }
 0x248   : > { %v708_v21 = vadd.f32 %v881_v19, %v699_v18 }
 0x249   : > { %v700_v20 = vld [vmem:[#allocation2 + $0x8] sm:$0xff] }
 0x24a   : > { %v709_v22 = vadd.f32 %v881_v19, %v700_v20  ;;  %710 = vst [vmem:[#allocation8] sm:$0xff] %v708_v21 }
 0x24c   : > { %711 = vst [vmem:[#allocation8 + $0x8] sm:$0xff] %v709_v22 }
 0x24d PF: > { %p1437_p8 = scmp.eq.s32.totalorder %s832_s24, 1  ;;  %s1190_s21 = smov [#allocation8]  }
 0x24e   : > { %s721_s16 = sshll.u32 %s1190_s21, 4  ;;  %s722_s16 = int_to_ptr.vmem [resolvable:$true] %s721_s16 }
 0x24f   : > { %s1095_s17 = scalar_lea.vmem %s722_s16, 256  ;;  %p1102_p10 = scmp.lt.s32.totalorder %s722_s16, %s722_s16 }
 0x250   : > { %p1096_p2 = scmp.ne.s32.totalorder %s722_s16, %s1095_s17  ;;  %p1103_p5 = scmp.lt.s32.totalorder %s1095_s17, %s1095_s17 }
 0x252   : > { %p1097_p3 = pnand %p1096_p2, %p1437_p8  ;;  %p1104_p6 = por %p1103_p5, %p1102_p10 }
 0x254   : > { %p1098_p0 = pneg %p1097_p3 }
 0x256   : > { %p1105_p11 = pnand %p1104_p6, %p1098_p0 }
 0x258   : > { %1108 = shalt.err (!%p1105_p11)
}
 0x259   : > { %s1109_s24 = scalar_lea.hbm %s1486_s5, 256 }
 0x25a   : > { %p1110_p13 = scmp.ne.s32.totalorder %s1486_s5, %s1109_s24  ;;  %p1115_p9 = scmp.lt.u32.totalorder %s1109_s24, %s1486_s5 }
 0x25c   : > { %p1111_p1 = pnand %p1110_p13, %p1437_p8 }
 0x25e   : > { %p1112_p7 = pneg %p1111_p1 }
 0x260   : > { %p1117_p12 = pnand %p1115_p9, %p1112_p7 }
 0x262   : > { %1120 = shalt.err (!%p1117_p12)
}
 0x263   : > { %s1191_s9 = smov 128   ;;  %s1192_s12 = smov 8  }
 0x264   : > { %915 = dma.vmem_to_hbm [thread:$0]  (%p1437_p8), %s722_s16, 256, %s1486_s5, [#allocation5], %s1191_s9, %s1191_s9, %s1192_s12  }
 0x265   : > { %1154 = dma.done.wait (%p1437_p8), [#allocation5], 256  }
 0x266   : > { %1156 = vsyncadd (%p1437_p8), [#allocation5], 4294967040 }
 0x267 PF: > { %s22_s23 = sadd.s32 1, %s1179_s23   ;;  %s1495_s18 = smov %s1163_s19 }
 0x268   : > { %p19_p4 = scmp.ge.s32.totalorder %s22_s23, 4   ;;  %s1496_s19 = smov %s1167_s20 }
 0x269   : > { %s1497_s20 = smov %s1274_s30  ;;  %s1498_s21 = smov %s1175_s22 }
 0x26a   : > { %s1499_s22 = smov %s1501_s25  ;;  %21 = sbr.rel (!%p19_p4) target bundleno = 7 (0x7), region = 105 }
 0x271   :  { %737 = vsyncpa [#allocation4], 1 }
 0x272   :  { %739 = vsyncpa [#allocation4 + $0x1], 1 }
 0x273   :  { %740 = vsyncpa [#allocation7], 1 }
 0x274   :  { %742 = vsyncpa [#allocation7 + $0x1], 1 }
 0x275   :  { %743 = vsyncpa [#allocation5], 1 }
 0x276   :  { %745 = vsyncpa [#allocation5 + $0x1], 1 }

</bundles_post_ra>
